<compile_context>
chip_gen: v7x
topology: tpu7x:2x2x1
jax: 0.10.0
libtpu: 0.0.40
codegen_flags: <defaults>
</compile_context>

<pallas_src>
import jax
import jax.numpy as jnp
from jax.experimental import pallas as pl
from jax.experimental.pallas import tpu as pltpu

_LANE = 128
_SUBLANE = 8


def _round_up(x, m):
    return ((x + m - 1) // m) * m


# ---------------------------------------------------------------------------
# Kernels
# ---------------------------------------------------------------------------
def _entropy_cols_kernel(p_ref, o_ref):
    """Small-V path. p_ref: (V, LT) — V on sublanes, rows on lanes.
    o_ref: (1, LT) lane-dense row of per-policy-row entropies."""
    p = p_ref[...].astype(jnp.float32)
    ent = jnp.sum(p * jnp.log(p), axis=0, keepdims=True)   # sublane reduce -> (1, LT)
    o_ref[...] = ent.astype(o_ref.dtype)


def _entropy_rows_kernel(p_ref, o_ref):
    """Large-V path. p_ref: (RT, V) — rows on sublanes, V fills the lanes.
    o_ref: (RT, 1)."""
    p = p_ref[...].astype(jnp.float32)
    ent = jnp.sum(p * jnp.log(p), axis=-1, keepdims=True)   # lane reduce -> (RT, 1)
    o_ref[...] = ent.astype(o_ref.dtype)


# ---------------------------------------------------------------------------
# Wrapper (the _to_batch / _from_batch reshapes are plain-JAX glue)
# ---------------------------------------------------------------------------
def entropy_regularisation_loss(policies, tformat="a*bs*t*v", *,
                                target_block_bytes=2 * 1024 * 1024):
    """policies: [A, BS, T, V] float array -> [A, BS, T, 1] (same dtype)."""
    assert tformat == "a*bs*t*v"
    a, bs, t, v = policies.shape
    n = a * bs * t
    dtype = policies.dtype
    itemsize = jnp.dtype(dtype).itemsize
    p2d = policies.reshape(n, v)

    compiler_params = pltpu.CompilerParams(dimension_semantics=("parallel",))

    if v < _LANE:
        # ---- rows on lanes, V on sublanes; lane-dense [1, N] output ----
        lt = max(_LANE, (target_block_bytes // (v * itemsize)) // _LANE * _LANE)
        lt = min(lt, _round_up(n, _LANE))
        n_pad = _round_up(n, lt)
        pt = jnp.transpose(p2d)                                   # (v, n)
        if n_pad != n:
            # pad with 1.0: 1*log(1) == 0, so no NaN and zero contribution.
            pt = jnp.pad(pt, ((0, 0), (0, n_pad - n)), constant_values=1.0)
        grid = (n_pad // lt,)
        out = pl.pallas_call(
            _entropy_cols_kernel,
            out_shape=jax.ShapeDtypeStruct((1, n_pad), dtype),
            grid_spec=pl.GridSpec(
                grid=grid,
                in_specs=[pl.BlockSpec((v, lt), lambda i: (0, i))],
                out_specs=pl.BlockSpec((1, lt), lambda i: (0, i)),
            ),
            compiler_params=compiler_params,
        )(pt)
        ent = out[0, :n]
    else:
        # ---- V already fills the lane axis; stream big row tiles ----
        rt = max(_SUBLANE,
                 (target_block_bytes // (v * itemsize)) // _SUBLANE * _SUBLANE)
        rt = min(rt, _round_up(n, _SUBLANE))
        n_pad = _round_up(n, rt)
        if n_pad != n:
            p2d = jnp.pad(p2d, ((0, n_pad - n), (0, 0)), constant_values=1.0)
        grid = (n_pad // rt,)
        out = pl.pallas_call(
            _entropy_rows_kernel,
            out_shape=jax.ShapeDtypeStruct((n_pad, 1), dtype),
            grid_spec=pl.GridSpec(
                grid=grid,
                in_specs=[pl.BlockSpec((rt, v), lambda i: (i, 0))],
                out_specs=pl.BlockSpec((rt, 1), lambda i: (i, 0)),
            ),
            compiler_params=compiler_params,
        )(p2d)
        ent = out[:n, 0]

    return ent.reshape(a, bs, t, 1)


def _reference(policies):
    p = policies.astype(jnp.float32)
    ent = jnp.sum(p * jnp.log(p), axis=-1, keepdims=True)
    return ent.astype(policies.dtype)


if __name__ == "__main__":
    key = jax.random.PRNGKey(0)
    k1, k2 = jax.random.split(key)

    # Test 1: typical RL policy head (small action dim): A=2, BS=2, T=8, V=8.
    A, BS, T, V = 2, 2, 8, 8
    logits = jax.random.normal(k1, (A, BS, T, V), dtype=jnp.float32)
    policies = jax.nn.softmax(logits, axis=-1)       # strictly positive probs
    out = jax.block_until_ready(entropy_regularisation_loss(policies, "a*bs*t*v"))
    ref = _reference(policies)
    assert out.shape == (A, BS, T, 1)
    assert jnp.allclose(out, ref, atol=1e-5, rtol=1e-5), "small-V path mismatch"

    # Test 2: large action dim exercises the lane-reduction path.
    A2, BS2, T2, V2 = 1, 2, 4, 256
    logits2 = jax.random.normal(k2, (A2, BS2, T2, V2), dtype=jnp.float32)
    policies2 = jax.nn.softmax(logits2, axis=-1)
    out2 = jax.block_until_ready(entropy_regularisation_loss(policies2, "a*bs*t*v"))
    ref2 = _reference(policies2)
    assert out2.shape == (A2, BS2, T2, 1)
    assert jnp.allclose(out2, ref2, atol=1e-5, rtol=1e-5), "large-V path mismatch"

    print("KERNEL_OK")
</pallas_src>

<mosaic_0001>
module attributes {stable_mosaic.version = 11 : i64} {
  func.func @_entropy_cols_kernel(%arg0: i32, %arg1: memref<8x128xf32, #tpu.memory_space<vmem>>, %arg2: memref<1x128xf32, #tpu.memory_space<vmem>>) attributes {dimension_semantics = [#tpu.dimension_semantics<parallel>], iteration_bounds = array<i64: 1>, scalar_prefetch = 0 : i64, scratch_operands = 0 : i64, tpu.core_type = #tpu.core_type<tc>, window_params = [{transform_indices = @transform_0, window_bounds = array<i64: 8, 128>}, {transform_indices = @transform_1, window_bounds = array<i64: 1, 128>}]} {
    %c0 = arith.constant 0 : index
    %c0_0 = arith.constant 0 : index
    %0 = vector.load %arg1[%c0, %c0_0] : memref<8x128xf32, #tpu.memory_space<vmem>>, vector<8x128xf32>
    %1 = math.log %0 : vector<8x128xf32>
    %2 = arith.mulf %0, %1 : vector<8x128xf32>
    %cst = arith.constant dense<0.000000e+00> : vector<128xf32>
    %3 = vector.multi_reduction <add>, %2, %cst [0] : vector<8x128xf32> to vector<128xf32>
    %4 = vector.shape_cast %3 : vector<128xf32> to vector<1x128xf32>
    %c0_1 = arith.constant 0 : index
    %c0_2 = arith.constant 0 : index
    %5 = vector.load %arg2[%c0_1, %c0_2] : memref<1x128xf32, #tpu.memory_space<vmem>>, vector<1x128xf32>
    tpu.vector_store %arg2[%c0_1, %c0_2], %4 {strides = array<i32>} : memref<1x128xf32, #tpu.memory_space<vmem>>, vector<1x128xf32>,
    return
  }
  func.func @transform_0(%arg0: i32) -> (i32, i32) {
    %c0_i32 = arith.constant 0 : i32
    %c0_i32_0 = arith.constant 0 : i32
    return %c0_i32, %arg0 : i32, i32
  }
  func.func @transform_1(%arg0: i32) -> (i32, i32) {
    %c0_i32 = arith.constant 0 : i32
    %c0_i32_0 = arith.constant 0 : i32
    return %c0_i32, %arg0 : i32, i32
  }
}

</mosaic_0001>

<bundles_post_ra>
// kernel: tpu_custom_call.1
= control target key start
LH: loop header
LB: loop body
LE: loop exit
PB: predicated region body
PF: predicated region fallthrough
CT: control target
= control target key end

     0   :  { %6 = vsyncpa [#allocation3], 0  ;;  %s135_s0 = inlined_call_operand.hbm [shape: f32[8,128], index: 0, kind: input, shape index: {}]   ;;  %s136_s1 = inlined_call_operand.hbm [shape: f32[1,128], index: 1, kind: output, shape index: {}]  }
   0x1   :  { %7 = vsyncpa [#allocation4], 0  ;;  %s99_s6 = smov [#allocation2]   ;;  %s51_s10 = scalar_lea.hbm %s135_s0, 128 }
   0x2   :  { %s14_s7 = sshll.u32 %s99_s6, 4  ;;  %p52_p0 = scmp.ne.s32.totalorder %s135_s0, %s51_s10  ;;  %s15_s7 = int_to_ptr.vmem [resolvable:$true] %s14_s7 }
   0x3   :  { %p55_p1 = scmp.lt.u32.totalorder %s51_s10, %s135_s0 }
   0x5   :  { %p57_p2 = pnand %p55_p1, %p52_p0 }
   0x7   :  { %60 = shalt.err (!%p57_p2)
}
   0x8   :  { %s61_s15 = scalar_lea.vmem %s15_s7, 128  ;;  %p66_p4 = scmp.lt.s32.totalorder %s15_s7, %s15_s7 }
   0x9   :  { %p62_p3 = scmp.ne.s32.totalorder %s15_s7, %s61_s15  ;;  %p67_p5 = scmp.lt.s32.totalorder %s61_s15, %s61_s15 }
   0xb   :  { %p68_p6 = por %p67_p5, %p66_p4 }
   0xd   :  { %p69_p7 = pnand %p68_p6, %p62_p3 }
   0xf   :  { %72 = shalt.err (!%p69_p7)
}
  0x10   :  { %17 = dma.hbm_to_vmem [thread:$0]  %s135_s0, 128, %s15_s7, [#allocation3]  }
  0x11   :  { %95 = dma.done.wait [#allocation3], 128  }
  0x12   :  { %96 = vsyncadd [#allocation3], 4294967168  ;;  %v21_v0 = vld [vmem:[#allocation2] sm:$0xff]  ;;  %s100_s18 = smov [#allocation5]  }
  0x13   :  { %49 = vlog2.f32 %v21_v0  ;;  %s38_s19 = sshll.u32 %s100_s18, 4  ;;  %s39_s19 = int_to_ptr.vmem [resolvable:$true] %s38_s19 }
  0x14   :  { %s73_s20 = scalar_lea.vmem %s39_s19, 16  ;;  %s77_s0 = scalar_lea.vmem %s39_s19, 32 }
  0x15   :  { %p74_p8 = scmp.ne.s32.totalorder %s39_s19, %s73_s20  ;;  %p78_p9 = scmp.lt.s32.totalorder %s39_s19, %s39_s19 }
  0x16   :  { %p79_p10 = scmp.lt.s32.totalorder %s77_s0, %s73_s20 }
  0x18   :  { %p80_p11 = por %p79_p10, %p78_p9 }
  0x1a   :  { %p81_p12 = pnand %p80_p11, %p74_p8 }
  0x1d   :  { %v50_v1 = vpop.eup %49 }
  0x1e   :  { %v23_v2 = vmul.f32 0.6931472, %v50_v1 }
  0x20   :  { %v24_v3 = vmul.f32 %v23_v2, %v21_v0 }
  0x22   :  { %v25_v4 = vrot.slane %v24_v3, 4 }
  0x24   :  { %v26_v5 = vadd.f32 %v25_v4, %v24_v3 }
  0x26   :  { %v27_v6 = vrot.slane %v26_v5, 2 }
  0x28   :  { %v28_v7 = vadd.f32 %v27_v6, %v26_v5 }
  0x2a   :  { %v29_v8 = vrot.slane %v28_v7, 1 }
  0x2c   :  { %v30_v9 = vadd.f32 %v29_v8, %v28_v7 }
  0x2e   :  { %31 = vst [vmem:[#allocation5] sm:$0x1] %v30_v9 }
  0x2f   :  { %84 = shalt.err (!%p81_p12)
}
  0x30   :  { %s85_s23 = scalar_lea.hbm %s136_s1, 16 }
  0x31   :  { %p86_p13 = scmp.ne.s32.totalorder %s136_s1, %s85_s23  ;;  %p89_p0 = scmp.lt.u32.totalorder %s85_s23, %s136_s1 }
  0x33   :  { %p91_p1 = pnand %p89_p0, %p86_p13 }
  0x35   :  { %94 = shalt.err (!%p91_p1)
}
  0x36   :  { %41 = dma.vmem_to_hbm [thread:$0]  %s39_s19, 16, %s136_s1, [#allocation4]  }
  0x37   :  { %97 = dma.done.wait [#allocation4], 16  }
  0x38   :  { %98 = vsyncadd [#allocation4], 4294967280 }
  0x39   :  { %45 = vsyncpa [#allocation3], 1 }
  0x3a   :  { %46 = vsyncpa [#allocation4], 1 }

</bundles_post_ra>
